<compile_context>
chip_gen: v7x
topology: tpu7x:2x2x1
jax: 0.10.0
libtpu: 0.0.40
codegen_flags: <defaults>
</compile_context>

<pallas_src>
import jax
import jax.numpy as jnp
from jax.experimental import pallas as pl
from jax.experimental.pallas import tpu as pltpu

IMAGE_RGB_MEAN = [0.485, 0.456, 0.406]
IMAGE_RGB_STD = [0.229, 0.224, 0.225]
# Exact host-side reciprocals (double precision divide, cast at trace time)
IMAGE_RGB_INV_STD = [1.0 / s for s in IMAGE_RGB_STD]


def _round_up(v, m):
    return ((v + m - 1) // m) * m


def _rgb_kernel(x_ref, o_ref):
    # x_ref / o_ref: (1, 1, TILE_ROWS, LANE) block of one channel plane.
    # Channel index comes from the grid; mean / inv_std are compile-time
    # constants selected with cheap scalar ops (no VMEM traffic).
    c = pl.program_id(1)
    mean = jnp.where(
        c == 0, IMAGE_RGB_MEAN[0],
        jnp.where(c == 1, IMAGE_RGB_MEAN[1], IMAGE_RGB_MEAN[2]))
    inv_std = jnp.where(
        c == 0, IMAGE_RGB_INV_STD[0],
        jnp.where(c == 1, IMAGE_RGB_INV_STD[1], IMAGE_RGB_INV_STD[2]))
    o_ref[...] = ((x_ref[...] - mean) * inv_std).astype(o_ref.dtype)


def rgb_normalize(x, *, lane=512, max_tile_rows=256):
    """x: (N, 3, H, W) float -> (N, 3, H, W), (x - mean) / std per channel."""
    N, C, H, W = x.shape
    assert C == 3
    HW = H * W
    dtype = x.dtype

    # Lane-dense layout: flatten HW, reshape each channel plane to
    # (rows, lane). lane is a multiple of 128 (<= 512), rows padded to a
    # multiple of tile_rows (itself a multiple of 8) -> full (8,128) vregs.
    lane = max(128, min(_round_up(lane, 128), _round_up(HW, 128)))
    rows = pl.cdiv(HW, lane)
    tile_rows = min(max_tile_rows, _round_up(rows, 8))   # block <= ~0.5 MiB f32
    rows_pad = _round_up(rows, tile_rows)
    hw_pad = rows_pad * lane

    x_flat = x.reshape(N, C, HW)
    if hw_pad != HW:
        x_flat = jnp.pad(x_flat, ((0, 0), (0, 0), (0, hw_pad - HW)))
    x4 = x_flat.reshape(N, C, rows_pad, lane)

    grid = (N, C, rows_pad // tile_rows)
    blk = (1, 1, tile_rows, lane)

    out = pl.pallas_call(
        _rgb_kernel,
        out_shape=jax.ShapeDtypeStruct((N, C, rows_pad, lane), dtype),
        grid_spec=pltpu.PrefetchScalarGridSpec(
            num_scalar_prefetch=0,
            grid=grid,
            in_specs=[pl.BlockSpec(blk, lambda n, c, r: (n, c, r, 0))],
            out_specs=pl.BlockSpec(blk, lambda n, c, r: (n, c, r, 0)),
        ),
        compiler_params=pltpu.CompilerParams(
            dimension_semantics=("parallel", "parallel", "parallel"),
        ),
    )(x4)

    out = out.reshape(N, C, hw_pad)[:, :, :HW].reshape(N, C, H, W)
    return out


if __name__ == "__main__":
    key = jax.random.PRNGKey(0)
    x = jax.random.uniform(key, (2, 3, 16, 16), dtype=jnp.float32)

    y = rgb_normalize(x)
    jax.block_until_ready(y)

    # Reference in plain JAX (matches the PyTorch module's forward).
    mean_ref = jnp.asarray(IMAGE_RGB_MEAN, dtype=jnp.float32).reshape(1, 3, 1, 1)
    std_ref = jnp.asarray(IMAGE_RGB_STD, dtype=jnp.float32).reshape(1, 3, 1, 1)
    y_ref = (x - mean_ref) / std_ref
    assert y.shape == y_ref.shape
    assert jnp.allclose(y, y_ref, atol=1e-6, rtol=1e-5), float(
        jnp.max(jnp.abs(y - y_ref)))

    print("KERNEL_OK")
</pallas_src>

<mosaic_0001>
module attributes {stable_mosaic.version = 11 : i64} {
  func.func @_rgb_kernel(%arg0: i32, %arg1: i32, %arg2: i32, %arg3: memref<1x1x8x256xf32, #tpu.memory_space<vmem>>, %arg4: memref<1x1x8x256xf32, #tpu.memory_space<vmem>>) attributes {dimension_semantics = [#tpu.dimension_semantics<parallel>, #tpu.dimension_semantics<parallel>, #tpu.dimension_semantics<parallel>], iteration_bounds = array<i64: 2, 3, 1>, scalar_prefetch = 0 : i64, scratch_operands = 0 : i64, tpu.core_type = #tpu.core_type<tc>, window_params = [{transform_indices = @transform_0, window_bounds = array<i64: 1, 1, 8, 256>}, {transform_indices = @transform_1, window_bounds = array<i64: 1, 1, 8, 256>}]} {
    %c0_i32 = arith.constant 0 : i32
    %0 = arith.cmpi eq, %arg1, %c0_i32 : i32
    %c1_i32 = arith.constant 1 : i32
    %1 = arith.cmpi eq, %arg1, %c1_i32 : i32
    %cst = arith.constant 4.560000e-01 : f32
    %cst_0 = arith.constant 4.060000e-01 : f32
    %2 = arith.select %1, %cst, %cst_0 : f32
    %cst_1 = arith.constant 4.850000e-01 : f32
    %3 = arith.select %0, %cst_1, %2 : f32
    %c0_i32_2 = arith.constant 0 : i32
    %4 = arith.cmpi eq, %arg1, %c0_i32_2 : i32
    %c1_i32_3 = arith.constant 1 : i32
    %5 = arith.cmpi eq, %arg1, %c1_i32_3 : i32
    %cst_4 = arith.constant 4.46428585 : f32
    %cst_5 = arith.constant 4.44444466 : f32
    %6 = arith.select %5, %cst_4, %cst_5 : f32
    %cst_6 = arith.constant 4.36681223 : f32
    %7 = arith.select %4, %cst_6, %6 : f32
    %c0 = arith.constant 0 : index
    %c0_7 = arith.constant 0 : index
    %c0_8 = arith.constant 0 : index
    %c0_9 = arith.constant 0 : index
    %8 = vector.load %arg3[%c0, %c0_7, %c0_8, %c0_9] : memref<1x1x8x256xf32, #tpu.memory_space<vmem>>, vector<1x1x8x256xf32>
    %9 = vector.broadcast %3 : f32 to vector<1x1x8x256xf32>
    %10 = arith.subf %8, %9 : vector<1x1x8x256xf32>
    %11 = vector.broadcast %7 : f32 to vector<1x1x8x256xf32>
    %12 = arith.mulf %10, %11 : vector<1x1x8x256xf32>
    %c0_10 = arith.constant 0 : index
    %c0_11 = arith.constant 0 : index
    %c0_12 = arith.constant 0 : index
    %c0_13 = arith.constant 0 : index
    %13 = vector.load %arg4[%c0_10, %c0_11, %c0_12, %c0_13] : memref<1x1x8x256xf32, #tpu.memory_space<vmem>>, vector<1x1x8x256xf32>
    tpu.vector_store %arg4[%c0_10, %c0_11, %c0_12, %c0_13], %12 {strides = array<i32>} : memref<1x1x8x256xf32, #tpu.memory_space<vmem>>, vector<1x1x8x256xf32>,
    return
  }
  func.func @transform_0(%arg0: i32, %arg1: i32, %arg2: i32) -> (i32, i32, i32, i32) {
    %c0_i32 = arith.constant 0 : i32
    %c0_i32_0 = arith.constant 0 : i32
    return %arg0, %arg1, %arg2, %c0_i32 : i32, i32, i32, i32
  }
  func.func @transform_1(%arg0: i32, %arg1: i32, %arg2: i32) -> (i32, i32, i32, i32) {
    %c0_i32 = arith.constant 0 : i32
    %c0_i32_0 = arith.constant 0 : i32
    return %arg0, %arg1, %arg2, %c0_i32 : i32, i32, i32, i32
  }
}

</mosaic_0001>

<bundles_post_ra>
// kernel: tpu_custom_call.1
= control target key start
LH: loop header
LB: loop body
LE: loop exit
PB: predicated region body
PF: predicated region fallthrough
CT: control target
= control target key end

     0   :  { %6 = vsyncpa [#allocation3], 0  ;;  %s726_s0 = inlined_call_operand.hbm [shape: f32[2,3,8,256], index: 0, kind: input, shape index: {}]   ;;  %s727_s1 = inlined_call_operand.hbm [shape: f32[2,3,8,256], index: 1, kind: output, shape index: {}]  }
   0x1   :  { %8 = vsyncpa [#allocation3 + $0x1], 0 }
   0x2   :  { %9 = vsyncpa [#allocation4], 0 }
   0x3   :  { %11 = vsyncpa [#allocation4 + $0x1], 0  ;;  %s530_s6 = smov 0   ;;  %s532_s7 = smov 0  }
   0x4   :  { %s534_s8 = smov 0   ;;  %s536_s9 = smov 0  }
   0x5   :  { %s538_s10 = smov 0   ;;  %s540_s11 = smov 0  }
   0x6   :  { %s542_s12 = smov 0   ;;  %s544_s13 = smov 0  }
   0x7 LB: > { %s293_s14 = sadd.s32 4294967295, %s516_s13   ;;  %s294_s15 = sadd.s32 4294967294, %s516_s13   ;;  %s516_s13 = sphi %s544_s13, %s17_s13   ;;  %s512_s12 = sphi %s542_s12, %s744_s12   ;;  %s508_s11 = sphi %s540_s11, %s743_s11   ;;  %s504_s10 = sphi %s538_s10, %s742_s10   ;;  %s500_s9 = sphi %s536_s9, %s741_s9   ;;  %s496_s8 = sphi %s534_s8, %s740_s8   ;;  %s492_s7 = sphi %s532_s7, %s739_s7   ;;  %s488_s6 = sphi %s530_s6, %s738_s6  }
   0x8   : > { %s32_s16 = sadd.s32 1, %s508_s11  ;;  %s36_s17 = sadd.s32 1, %s512_s12 }
   0x9   : > { %p34_p0 = scmp.ge.s32.totalorder %s32_s16, 3  ;;  %s47_s18 = sadd.s32 1, %s496_s8 }
   0xa   : > { %p54_p1 = scmp.ne.s32.totalorder %s496_s8, %s492_s7  ;;  %p55_p2 = scmp.eq.s32.totalorder %s516_s13, 0 }
   0xb   : > { %s746_s16 = smov (%p34_p0, %s32_s16), 0  ;;  %s748_s17 = smov (!%p34_p0, %s36_s17), %s512_s12 }
   0xc   : > { %s41_s19 = ssub.s32 %s508_s11, %s746_s16  ;;  %p583_p3 = por %p55_p2, %p54_p1 }
   0xd   : > { %p38_p4 = scmp.ge.s32.totalorder %s748_s17, 2  ;;  %p60_p5 = scmp.ne.s32.totalorder %s492_s7, %s488_s6 }
   0xe   : > { %p61_p6 = scmp.eq.s32.totalorder %s293_s14, 0  ;;  %p88_p7 = scmp.eq.s32.totalorder %s293_s14, 5 }
   0xf   : > { %s750_s17 = smov (%p38_p4, %s748_s17), 0  ;;  %p94_p10 = scmp.eq.s32.totalorder %s294_s15, 5 }
  0x10   : > { %p591_p8 = por %p61_p6, %p60_p5  ;;  %p595_p9 = por %p88_p7, %p54_p1 }
  0x11   : > { %s40_s23 = ssub.s32 %s512_s12, %s750_s17  ;;  %p601_p12 = por %p94_p10, %p60_p5 }
  0x12   : > { %s731_s22 = scalar_select %p595_p9, 1, 0 }
  0x13   : > { %s42_s24 = sor.u32 %s41_s19, %s40_s23  ;;  %p322_p13 = scmp.lt.s32.totalorder %s516_s13, 6 }
  0x14   : > { %p45_p11 = scmp.eq.s32.totalorder %s42_s24, 0  ;;  %s114_s26 = sand.u32 1, %s496_s8  }
  0x15   : > { %s732_s25 = scalar_select %p601_p12, 1, 0 }
  0x16   : > { %s608_s27 = scalar_select %p45_p11, %s496_s8, %s47_s18  }
  0x17   : > { %s297_s28 = sshll.u32 %s114_s26, 4  ;;  %s298_s29 = sshll.u32 %s508_s11, 1 }
  0x18   : > { %s308_s30 = smul.u32 6, %s512_s12  ;;  %s118_s2 = scalar_lea.vmem [#allocation2], %s297_s28 }
  0x19   : > { %s130_s3 = sshll.u32 %s118_s2, 4  ;;  %p616_p0 = pnand %p322_p13, %p583_p3  ;;  %s612_s3 = int_to_ptr.vmem [resolvable:$true] %s130_s3 }
  0x1a   : > { %s126_s5 = sadd.s32 %s308_s30, %s298_s29  ;;  %s115_s20 = scalar_lea.sflag [#allocation3], %s114_s26 }
  0x1b   : > { %s299_s14 = sshll.u32 %s126_s5, 7  ;;  %p390_p4 = pneg %p616_p0 }
  0x1c   : > { %s624_s19 = scalar_lea.hbm %s726_s0, %s299_s14  ;;  %s393_s29 = scalar_lea.hbm %s726_s0, 1536 }
  0x1d   : > { %s388_s23 = scalar_lea.hbm %s624_s19, 256  ;;  %p394_p7 = scmp.lt.u32.totalorder %s624_s19, %s726_s0 }
  0x1e   : > { %p389_p3 = scmp.ne.s32.totalorder %s624_s19, %s388_s23  ;;  %p395_p10 = scmp.lt.u32.totalorder %s393_s29, %s388_s23 }
  0x1f   : > { %p397_p13 = scmp.lt.u32.totalorder %s388_s23, %s624_s19 }
  0x20   : > { %p391_p5 = pnand %p390_p4, %p389_p3  ;;  %p396_p11 = por %p395_p10, %p394_p7 }
  0x22   : > { %p392_p6 = pneg %p391_p5  ;;  %p398_p1 = por %p397_p13, %p396_p11 }
  0x24   : > { %p399_p2 = pnand %p398_p1, %p392_p6 }
  0x26   : > { %402 = shalt.err (!%p399_p2)
}
  0x27   : > { %s403_s26 = scalar_lea.vmem %s612_s3, 256  ;;  %s518_s5 = smov [#allocation2]  }
  0x28   : > { %p404_p3 = scmp.ne.s32.totalorder %s612_s3, %s403_s26  ;;  %s408_s14 = sshll.u32 %s518_s5, 4  ;;  %s409_s14 = int_to_ptr.vmem [resolvable:$false] %s408_s14 }
  0x29   : > { %s410_s15 = scalar_lea.vmem %s409_s14, 512  ;;  %p411_p9 = scmp.lt.s32.totalorder %s612_s3, %s409_s14 }
  0x2a   : > { %p406_p5 = pnand %p404_p3, %p390_p4  ;;  %p412_p7 = scmp.lt.s32.totalorder %s410_s15, %s403_s26 }
  0x2c   : > { %p407_p12 = pneg %p406_p5  ;;  %p413_p10 = por %p412_p7, %p411_p9 }
  0x2e   : > { %p414_p11 = pnand %p413_p10, %p407_p12 }
  0x30   : > { %417 = shalt.err (!%p414_p11)
}
  0x31   : > { %317 = dma.hbm_to_vmem [thread:$0]  (!%p616_p0), %s624_s19, 256, %s612_s3, %s115_s20  }
  0x32   : > { %p734_p1 = scmp.lt.s32.totalorder %s516_s13, 7  ;;  %p735_p2 = scmp.ge.s32.totalorder %s516_s13, 1 }
  0x34   : > { %p136_p4 = pnand %p735_p2, %p734_p1 }
  0x35   : > { %s657_s18 = sand.u32 (!%p136_p4), 1, %s492_s7  }
  0x36   : > { %139 = sbr.rel (%p136_p4) target bundleno = 93 (0x5d), region = 24  ;;  %s301_s23 = sshll.u32 (!%p136_p4), %s657_s18, 4 }
  0x37   : > { %s142_s24 = scalar_lea.sflag (!%p136_p4), [#allocation3], %s657_s18  ;;  %s145_s28 = scalar_lea.vmem (!%p136_p4), [#allocation2], %s301_s23 }
  0x3d   : > { %479 = dma.done.wait (%p591_p8), %s142_s24, 256  }
  0x3e   : > { %481 = vsyncadd (%p591_p8), %s142_s24, 4294967040  ;;  %p164_p9 = scmp.eq.s32.totalorder %s500_s9, 0  ;;  %p165_p12 = scmp.eq.s32.totalorder %s500_s9, 1  ;;  %v170_v0 = vld [vmem:[%s145_s28] sm:$0xff]  ;;  %v171_v2 = vld [vmem:[%s145_s28 + $0x8] sm:$0xff] }
  0x3f   : > { %s163_s3 = scalar_lea.vmem [#allocation5], %s301_s23  ;;  %s304_s29 = sshll.u32 %s500_s9, 1 }
  0x40   : > { %s199_s4 = sshll.u32 %s163_s3, 4  ;;  %s309_s21 = smul.u32 6, %s504_s10  ;;  %s669_s4 = int_to_ptr.vmem [resolvable:$true] %s199_s4 }
  0x41   : > { %s166_s19 = scalar_select %p165_p12, 0.456, 0.406 }
  0x42   : > { %s168_s20 = scalar_select %p165_p12, 4.464286, 4.4444447 }
  0x43   : > { %s752_s19 = smov (%p164_p9, %s166_s19), 0.485  ;;  %s195_s30 = sadd.s32 %s309_s21, %s304_s29 }
  0x44   : > { %s754_s20 = smov (%p164_p9, %s168_s20), 4.366812  ;;  %v172_v1 = vstv %s752_s19  ;;  %s305_s2 = sshll.u32 %s195_s30, 7 }
  0x45   : > { %v173_v3 = vsub.f32 %v170_v0, %v172_v1  ;;  %v175_v4 = vstv %s754_s20  ;;  %v174_v5 = vsub.f32 %v171_v2, %v172_v1  ;;  %s674_s14 = scalar_lea.hbm %s727_s1, %s305_s2  ;;  %s181_s9 = scalar_lea.sflag [#allocation4], %s657_s18 }
  0x46   : > { %s418_s10 = scalar_lea.vmem %s669_s4, 256  ;;  %p736_p0 = scmp.ne.s32.totalorder %s731_s22, 0 }
  0x47   : > { %v176_v6 = vmul.f32 %v175_v4, %v173_v3  ;;  %v177_v7 = vmul.f32 %v175_v4, %v174_v5  ;;  %p419_p8 = scmp.ne.s32.totalorder %s669_s4, %s418_s10  ;;  %s519_s15 = smov [#allocation5]  }
  0x48   : > { %s422_s23 = sshll.u32 %s519_s15, 4  ;;  %s423_s23 = int_to_ptr.vmem [resolvable:$false] %s422_s23 }
  0x49   : > { %178 = vst [vmem:[%s163_s3] sm:$0xff] %v176_v6  ;;  %179 = vst [vmem:[%s163_s3 + $0x8] sm:$0xff] %v177_v7  ;;  %p420_p6 = pnand %p419_p8, %p736_p0  ;;  %s424_s24 = scalar_lea.vmem %s423_s23, 512 }
  0x4a   : > { %p425_p3 = scmp.lt.s32.totalorder %s669_s4, %s423_s23  ;;  %p426_p5 = scmp.lt.s32.totalorder %s424_s24, %s418_s10 }
  0x4b   : > { %p421_p13 = pneg %p420_p6 }
  0x4c   : > { %p427_p7 = por %p426_p5, %p425_p3 }
  0x4e   : > { %p428_p10 = pnand %p427_p7, %p421_p13 }
  0x50   : > { %431 = shalt.err (!%p428_p10)
}
  0x51   : > { %s432_s18 = scalar_lea.hbm %s674_s14, 256  ;;  %s436_s19 = scalar_lea.hbm %s727_s1, 1536 }
  0x52   : > { %p433_p11 = scmp.ne.s32.totalorder %s674_s14, %s432_s18  ;;  %p437_p4 = scmp.lt.u32.totalorder %s674_s14, %s727_s1 }
  0x53   : > { %p438_p9 = scmp.lt.u32.totalorder %s436_s19, %s432_s18  ;;  %p440_p8 = scmp.lt.u32.totalorder %s432_s18, %s674_s14 }
  0x54   : > { %p434_p1 = pnand %p433_p11, %p736_p0 }
  0x55   : > { %p439_p12 = por %p438_p9, %p437_p4 }
  0x56   : > { %p435_p2 = pneg %p434_p1 }
  0x57   : > { %p441_p6 = por %p440_p8, %p439_p12 }
  0x59   : > { %p442_p13 = pnand %p441_p6, %p435_p2 }
  0x5b   : > { %445 = shalt.err (!%p442_p13)
}
  0x5c   : > { %312 = dma.vmem_to_hbm [thread:$0]  (%p736_p0), %s669_s4, 256, %s674_s14, %s181_s9  }
  0x5d PF: > { %p323_p3 = scmp.ge.s32.totalorder %s516_s13, 2  ;;  %s211_s21 = sand.u32 1, %s488_s6  }
  0x5e   : > { %p737_p5 = scmp.ne.s32.totalorder %s732_s25, 0  ;;  %s212_s30 = scalar_lea.sflag [#allocation4], %s211_s21 }
  0x60   : > { %p319_p7 = pnand %p323_p3, %p737_p5 }
  0x62   : > { %483 = dma.done.wait (!%p319_p7), %s212_s30, 256  }
  0x63   : > { %485 = vsyncadd (!%p319_p7), %s212_s30, 4294967040  ;;  %s17_s13 = sadd.s32 1, %s516_s13   ;;  %s738_s6 = smov %s492_s7 }
  0x64   : > { %p14_p10 = scmp.ge.s32.totalorder %s17_s13, 8   ;;  %s739_s7 = smov %s496_s8 }
  0x65   : > { %s740_s8 = smov %s608_s27  ;;  %s741_s9 = smov %s508_s11 }
  0x66   : > { %s742_s10 = smov %s512_s12  ;;  %s743_s11 = smov %s746_s16 }
  0x67   : > { %s744_s12 = smov %s750_s17  ;;  %16 = sbr.rel (!%p14_p10) target bundleno = 7 (0x7), region = 69 }
  0x6e   :  { %217 = vsyncpa [#allocation3], 1 }
  0x6f   :  { %219 = vsyncpa [#allocation3 + $0x1], 1 }
  0x70   :  { %220 = vsyncpa [#allocation4], 1 }
  0x71   :  { %222 = vsyncpa [#allocation4 + $0x1], 1 }

</bundles_post_ra>
